<compile_context>
chip_gen: v7x
topology: tpu7x:2x2x1
jax: 0.10.0
libtpu: 0.0.40
codegen_flags: <defaults>
</compile_context>

<pallas_src>
import numpy as np
import jax
import jax.numpy as jnp
from jax.experimental import pallas as pl
from jax.experimental.pallas import tpu as pltpu

LANES = 128          # lane width of the packed parameter slab
MXU_MIN_TILE = 256   # batch-tile size at/above which the MXU body is used


def _row_offsets(latent_dim, h1_dim, h2_dim):
    r_w1 = 0
    r_b1 = r_w1 + latent_dim
    r_w2 = r_b1 + 1
    r_b2 = r_w2 + h1_dim
    r_w3 = r_b2 + 1
    r_b3 = r_w3 + h2_dim
    n_rows = r_b3 + 1
    return (r_w1, r_b1, r_w2, r_b2, r_w3, r_b3), n_rows


def pack_generator_params(params):
    """One-time packing of (w1,b1,w2,b2,w3,b3) into a lane-padded f32 slab.

    The (n_rows, 128) slab is the canonical parameter format for the kernel:
    pack once when parameters are created/updated, not on every forward call.
    Padded lanes (col >= fan_out) are zero.
    """
    def pad_lanes(a):
        a = jnp.asarray(a, jnp.float32)
        return jnp.pad(a, ((0, 0), (0, LANES - a.shape[1])))
    return jnp.concatenate([pad_lanes(a) for a in params], axis=0)


def _make_vpu_kernel(latent_dim, h1_dim, h2_dim, feature_size, offs):
    """Small-batch body: unrolled broadcast-FMA chain, exact f32 arithmetic."""
    r_w1, r_b1, r_w2, r_b2, r_w3, r_b3 = offs

    def kernel(z_ref, p_ref, out_ref):
        z = z_ref[...]                                     # (tile_b, latent)

        # Linear(latent, 4) + LeakyReLU(0.2)
        h = p_ref[r_b1:r_b1 + 1, :]
        for k in range(latent_dim):
            h = h + z[:, k:k + 1] * p_ref[r_w1 + k:r_w1 + k + 1, :]
        h = jnp.maximum(h, 0.2 * h)

        # Linear(4, 6) + LeakyReLU(0.2)
        g = p_ref[r_b2:r_b2 + 1, :]
        for k in range(h1_dim):
            g = g + h[:, k:k + 1] * p_ref[r_w2 + k:r_w2 + k + 1, :]
        g = jnp.maximum(g, 0.2 * g)

        # Linear(6, feature_size) + Tanh; tight feature_size-lane store.
        o = p_ref[r_b3:r_b3 + 1, :]
        for k in range(h2_dim):
            o = o + g[:, k:k + 1] * p_ref[r_w3 + k:r_w3 + k + 1, :]
        out_ref[...] = jnp.tanh(o[:, :feature_size])

    return kernel


def _make_mxu_kernel(latent_dim, h1_dim, h2_dim, feature_size, offs):
    """Large-batch body: three MXU matmuls straight from the shared slab."""
    r_w1, r_b1, r_w2, r_b2, r_w3, r_b3 = offs
    hi = jax.lax.Precision.HIGHEST

    def kernel(z_ref, p_ref, out_ref):
        z = z_ref[...]                                     # (tile_b, latent)

        h = jnp.dot(z, p_ref[r_w1:r_w1 + latent_dim, :],
                    preferred_element_type=jnp.float32, precision=hi)
        h = h + p_ref[r_b1:r_b1 + 1, :]
        h = jnp.maximum(h, 0.2 * h)

        g = jnp.dot(h[:, :h1_dim], p_ref[r_w2:r_w2 + h1_dim, :],
                    preferred_element_type=jnp.float32, precision=hi)
        g = g + p_ref[r_b2:r_b2 + 1, :]
        g = jnp.maximum(g, 0.2 * g)

        o = jnp.dot(g[:, :h2_dim], p_ref[r_w3:r_w3 + h2_dim, :],
                    preferred_element_type=jnp.float32, precision=hi)
        o = o + p_ref[r_b3:r_b3 + 1, :]
        out_ref[...] = jnp.tanh(o[:, :feature_size])

    return kernel


def generator_forward(z, param_slab, *, latent_dim, h1_dim, h2_dim, feature_size):
    """z: (B, latent_dim) f32, param_slab: packed (n_rows, 128) f32 slab
       -> (B, feature_size) f32  (== x.view(B, feature_size) of the module)."""
    B = z.shape[0]
    assert z.shape[1] == latent_dim
    offs, n_rows = _row_offsets(latent_dim, h1_dim, h2_dim)
    assert param_slab.shape == (n_rows, LANES)

    # Batch tiling: one step for small/medium B; 2048-row parallel tiles for
    # very large B (per-step VMEM footprint at 2048 rows is only ~a couple MB).
    tile_b = B if B <= 2048 else 2048
    grid = (pl.cdiv(B, tile_b),)

    make_kernel = _make_mxu_kernel if tile_b >= MXU_MIN_TILE else _make_vpu_kernel
    kernel = make_kernel(latent_dim, h1_dim, h2_dim, feature_size, offs)

    return pl.pallas_call(
        kernel,
        out_shape=jax.ShapeDtypeStruct((B, feature_size), jnp.float32),
        grid=grid,
        in_specs=[
            pl.BlockSpec((tile_b, latent_dim), lambda i: (i, 0)),   # z batch tile
            pl.BlockSpec((n_rows, LANES), lambda i: (0, 0)),        # whole param slab
        ],
        out_specs=pl.BlockSpec((tile_b, feature_size), lambda i: (i, 0)),
        compiler_params=pltpu.CompilerParams(
            dimension_semantics=("parallel",)),
    )(z, param_slab)


def init_params(key, latent_dim, feature_size):
    """Deterministic init mimicking PyTorch Linear default U(-1/sqrt(fan_in), ...)."""
    dims = [(latent_dim, 4), (4, 6), (6, feature_size)]
    params = []
    for i, (fan_in, fan_out) in enumerate(dims):
        kw, kb = jax.random.split(jax.random.fold_in(key, i))
        bound = 1.0 / np.sqrt(fan_in)
        w = jax.random.uniform(kw, (fan_in, fan_out), jnp.float32,
                               minval=-bound, maxval=bound)
        b = jax.random.uniform(kb, (1, fan_out), jnp.float32,
                               minval=-bound, maxval=bound)
        params += [w, b]
    return tuple(params)


def reference_forward(z, params):
    """Plain-JAX reference (full-f32 matmul precision) for correctness check."""
    w1, b1, w2, b2, w3, b3 = params
    hi = jax.lax.Precision.HIGHEST
    h = jnp.dot(z, w1, precision=hi) + b1
    h = jnp.where(h > 0, h, 0.2 * h)
    h = jnp.dot(h, w2, precision=hi) + b2
    h = jnp.where(h > 0, h, 0.2 * h)
    return jnp.tanh(jnp.dot(h, w3, precision=hi) + b3)


if __name__ == "__main__":
    # Module hyper-params (consistent with the PyTorch __init__).
    action_shape, state_shape, latent_dim = 4, 4, 3
    h1_dim, h2_dim = 4, 6
    feature_size = action_shape + 2 * state_shape + 1   # = 13

    key = jax.random.PRNGKey(0)
    kz, kp, kz2 = jax.random.split(key, 3)
    params = init_params(kp, latent_dim, feature_size)

    # Pack ONCE -- the slab is the canonical parameter format.
    slab = jax.block_until_ready(pack_generator_params(params))

    # 1) Module-sized case (B = 8): launch-overhead bound, VPU FMA body.
    batch = 8
    z = jax.random.normal(kz, (batch, latent_dim), jnp.float32)
    out = generator_forward(z, slab, latent_dim=latent_dim, h1_dim=h1_dim,
                            h2_dim=h2_dim, feature_size=feature_size)
    out = jax.block_until_ready(out)
    ref = reference_forward(z, params)
    assert out.shape == (batch, feature_size)
    np.testing.assert_allclose(np.asarray(out), np.asarray(ref),
                               rtol=1e-5, atol=1e-5)

    # 2) Large-batch case (B = 512): MXU body, single 512-row tile.
    batch2 = 512
    z2 = jax.random.normal(kz2, (batch2, latent_dim), jnp.float32)
    out2 = generator_forward(z2, slab, latent_dim=latent_dim, h1_dim=h1_dim,
                             h2_dim=h2_dim, feature_size=feature_size)
    out2 = jax.block_until_ready(out2)
    ref2 = reference_forward(z2, params)
    assert out2.shape == (batch2, feature_size)
    np.testing.assert_allclose(np.asarray(out2), np.asarray(ref2),
                               rtol=1e-4, atol=1e-4)

    print("KERNEL_OK")
</pallas_src>

<mosaic_0001>
module attributes {stable_mosaic.version = 11 : i64} {
  func.func @kernel(%arg0: i32, %arg1: memref<8x3xf32, #tpu.memory_space<vmem>>, %arg2: memref<16x128xf32, #tpu.memory_space<vmem>>, %arg3: memref<8x13xf32, #tpu.memory_space<vmem>>) attributes {dimension_semantics = [#tpu.dimension_semantics<parallel>], iteration_bounds = array<i64: 1>, scalar_prefetch = 0 : i64, scratch_operands = 0 : i64, tpu.core_type = #tpu.core_type<tc>, window_params = [{transform_indices = @transform_0, window_bounds = array<i64: 8, 3>}, {pipeline_mode = #tpu.pipeline_mode<synchronous>, transform_indices = @transform_1, window_bounds = array<i64: 16, 128>}, {transform_indices = @transform_2, window_bounds = array<i64: 8, 13>}]} {
    %c0 = arith.constant 0 : index
    %c0_0 = arith.constant 0 : index
    %0 = vector.load %arg1[%c0, %c0_0] : memref<8x3xf32, #tpu.memory_space<vmem>>, vector<8x3xf32>
    %c3 = arith.constant 3 : index
    %c0_1 = arith.constant 0 : index
    %1 = vector.load %arg2[%c3, %c0_1] : memref<16x128xf32, #tpu.memory_space<vmem>>, vector<1x128xf32>
    %2 = vector.extract_strided_slice %0 {offsets = [0, 0], sizes = [8, 1], strides = [1, 1]} : vector<8x3xf32> to vector<8x1xf32>
    %c0_2 = arith.constant 0 : index
    %c0_3 = arith.constant 0 : index
    %3 = vector.load %arg2[%c0_2, %c0_3] : memref<16x128xf32, #tpu.memory_space<vmem>>, vector<1x128xf32>
    %4 = vector.broadcast %2 : vector<8x1xf32> to vector<8x128xf32>
    %5 = vector.broadcast %3 : vector<1x128xf32> to vector<8x128xf32>
    %6 = arith.mulf %4, %5 : vector<8x128xf32>
    %7 = vector.broadcast %1 : vector<1x128xf32> to vector<8x128xf32>
    %8 = arith.addf %7, %6 : vector<8x128xf32>
    %9 = vector.extract_strided_slice %0 {offsets = [0, 1], sizes = [8, 1], strides = [1, 1]} : vector<8x3xf32> to vector<8x1xf32>
    %c1 = arith.constant 1 : index
    %c0_4 = arith.constant 0 : index
    %10 = vector.load %arg2[%c1, %c0_4] : memref<16x128xf32, #tpu.memory_space<vmem>>, vector<1x128xf32>
    %11 = vector.broadcast %9 : vector<8x1xf32> to vector<8x128xf32>
    %12 = vector.broadcast %10 : vector<1x128xf32> to vector<8x128xf32>
    %13 = arith.mulf %11, %12 : vector<8x128xf32>
    %14 = arith.addf %8, %13 : vector<8x128xf32>
    %15 = vector.extract_strided_slice %0 {offsets = [0, 2], sizes = [8, 1], strides = [1, 1]} : vector<8x3xf32> to vector<8x1xf32>
    %c2 = arith.constant 2 : index
    %c0_5 = arith.constant 0 : index
    %16 = vector.load %arg2[%c2, %c0_5] : memref<16x128xf32, #tpu.memory_space<vmem>>, vector<1x128xf32>
    %17 = vector.broadcast %15 : vector<8x1xf32> to vector<8x128xf32>
    %18 = vector.broadcast %16 : vector<1x128xf32> to vector<8x128xf32>
    %19 = arith.mulf %17, %18 : vector<8x128xf32>
    %20 = arith.addf %14, %19 : vector<8x128xf32>
    %cst = arith.constant 2.000000e-01 : f32
    %21 = vector.broadcast %cst : f32 to vector<8x128xf32>
    %22 = arith.mulf %21, %20 : vector<8x128xf32>
    %23 = arith.maximumf %20, %22 : vector<8x128xf32>
    %c8 = arith.constant 8 : index
    %c0_6 = arith.constant 0 : index
    %24 = vector.load %arg2[%c8, %c0_6] : memref<16x128xf32, #tpu.memory_space<vmem>>, vector<1x128xf32>
    %25 = vector.extract_strided_slice %23 {offsets = [0, 0], sizes = [8, 1], strides = [1, 1]} : vector<8x128xf32> to vector<8x1xf32>
    %c4 = arith.constant 4 : index
    %c0_7 = arith.constant 0 : index
    %26 = vector.load %arg2[%c4, %c0_7] : memref<16x128xf32, #tpu.memory_space<vmem>>, vector<1x128xf32>
    %27 = vector.broadcast %25 : vector<8x1xf32> to vector<8x128xf32>
    %28 = vector.broadcast %26 : vector<1x128xf32> to vector<8x128xf32>
    %29 = arith.mulf %27, %28 : vector<8x128xf32>
    %30 = vector.broadcast %24 : vector<1x128xf32> to vector<8x128xf32>
    %31 = arith.addf %30, %29 : vector<8x128xf32>
    %32 = vector.extract_strided_slice %23 {offsets = [0, 1], sizes = [8, 1], strides = [1, 1]} : vector<8x128xf32> to vector<8x1xf32>
    %c5 = arith.constant 5 : index
    %c0_8 = arith.constant 0 : index
    %33 = vector.load %arg2[%c5, %c0_8] : memref<16x128xf32, #tpu.memory_space<vmem>>, vector<1x128xf32>
    %34 = vector.broadcast %32 : vector<8x1xf32> to vector<8x128xf32>
    %35 = vector.broadcast %33 : vector<1x128xf32> to vector<8x128xf32>
    %36 = arith.mulf %34, %35 : vector<8x128xf32>
    %37 = arith.addf %31, %36 : vector<8x128xf32>
    %38 = vector.extract_strided_slice %23 {offsets = [0, 2], sizes = [8, 1], strides = [1, 1]} : vector<8x128xf32> to vector<8x1xf32>
    %c6 = arith.constant 6 : index
    %c0_9 = arith.constant 0 : index
    %39 = vector.load %arg2[%c6, %c0_9] : memref<16x128xf32, #tpu.memory_space<vmem>>, vector<1x128xf32>
    %40 = vector.broadcast %38 : vector<8x1xf32> to vector<8x128xf32>
    %41 = vector.broadcast %39 : vector<1x128xf32> to vector<8x128xf32>
    %42 = arith.mulf %40, %41 : vector<8x128xf32>
    %43 = arith.addf %37, %42 : vector<8x128xf32>
    %44 = vector.extract_strided_slice %23 {offsets = [0, 3], sizes = [8, 1], strides = [1, 1]} : vector<8x128xf32> to vector<8x1xf32>
    %c7 = arith.constant 7 : index
    %c0_10 = arith.constant 0 : index
    %45 = vector.load %arg2[%c7, %c0_10] : memref<16x128xf32, #tpu.memory_space<vmem>>, vector<1x128xf32>
    %46 = vector.broadcast %44 : vector<8x1xf32> to vector<8x128xf32>
    %47 = vector.broadcast %45 : vector<1x128xf32> to vector<8x128xf32>
    %48 = arith.mulf %46, %47 : vector<8x128xf32>
    %49 = arith.addf %43, %48 : vector<8x128xf32>
    %cst_11 = arith.constant 2.000000e-01 : f32
    %50 = vector.broadcast %cst_11 : f32 to vector<8x128xf32>
    %51 = arith.mulf %50, %49 : vector<8x128xf32>
    %52 = arith.maximumf %49, %51 : vector<8x128xf32>
    %c15 = arith.constant 15 : index
    %c0_12 = arith.constant 0 : index
    %53 = vector.load %arg2[%c15, %c0_12] : memref<16x128xf32, #tpu.memory_space<vmem>>, vector<1x128xf32>
    %54 = vector.extract_strided_slice %52 {offsets = [0, 0], sizes = [8, 1], strides = [1, 1]} : vector<8x128xf32> to vector<8x1xf32>
    %c9 = arith.constant 9 : index
    %c0_13 = arith.constant 0 : index
    %55 = vector.load %arg2[%c9, %c0_13] : memref<16x128xf32, #tpu.memory_space<vmem>>, vector<1x128xf32>
    %56 = vector.broadcast %54 : vector<8x1xf32> to vector<8x128xf32>
    %57 = vector.broadcast %55 : vector<1x128xf32> to vector<8x128xf32>
    %58 = arith.mulf %56, %57 : vector<8x128xf32>
    %59 = vector.broadcast %53 : vector<1x128xf32> to vector<8x128xf32>
    %60 = arith.addf %59, %58 : vector<8x128xf32>
    %61 = vector.extract_strided_slice %52 {offsets = [0, 1], sizes = [8, 1], strides = [1, 1]} : vector<8x128xf32> to vector<8x1xf32>
    %c10 = arith.constant 10 : index
    %c0_14 = arith.constant 0 : index
    %62 = vector.load %arg2[%c10, %c0_14] : memref<16x128xf32, #tpu.memory_space<vmem>>, vector<1x128xf32>
    %63 = vector.broadcast %61 : vector<8x1xf32> to vector<8x128xf32>
    %64 = vector.broadcast %62 : vector<1x128xf32> to vector<8x128xf32>
    %65 = arith.mulf %63, %64 : vector<8x128xf32>
    %66 = arith.addf %60, %65 : vector<8x128xf32>
    %67 = vector.extract_strided_slice %52 {offsets = [0, 2], sizes = [8, 1], strides = [1, 1]} : vector<8x128xf32> to vector<8x1xf32>
    %c11 = arith.constant 11 : index
    %c0_15 = arith.constant 0 : index
    %68 = vector.load %arg2[%c11, %c0_15] : memref<16x128xf32, #tpu.memory_space<vmem>>, vector<1x128xf32>
    %69 = vector.broadcast %67 : vector<8x1xf32> to vector<8x128xf32>
    %70 = vector.broadcast %68 : vector<1x128xf32> to vector<8x128xf32>
    %71 = arith.mulf %69, %70 : vector<8x128xf32>
    %72 = arith.addf %66, %71 : vector<8x128xf32>
    %73 = vector.extract_strided_slice %52 {offsets = [0, 3], sizes = [8, 1], strides = [1, 1]} : vector<8x128xf32> to vector<8x1xf32>
    %c12 = arith.constant 12 : index
    %c0_16 = arith.constant 0 : index
    %74 = vector.load %arg2[%c12, %c0_16] : memref<16x128xf32, #tpu.memory_space<vmem>>, vector<1x128xf32>
    %75 = vector.broadcast %73 : vector<8x1xf32> to vector<8x128xf32>
    %76 = vector.broadcast %74 : vector<1x128xf32> to vector<8x128xf32>
    %77 = arith.mulf %75, %76 : vector<8x128xf32>
    %78 = arith.addf %72, %77 : vector<8x128xf32>
    %79 = vector.extract_strided_slice %52 {offsets = [0, 4], sizes = [8, 1], strides = [1, 1]} : vector<8x128xf32> to vector<8x1xf32>
    %c13 = arith.constant 13 : index
    %c0_17 = arith.constant 0 : index
    %80 = vector.load %arg2[%c13, %c0_17] : memref<16x128xf32, #tpu.memory_space<vmem>>, vector<1x128xf32>
    %81 = vector.broadcast %79 : vector<8x1xf32> to vector<8x128xf32>
    %82 = vector.broadcast %80 : vector<1x128xf32> to vector<8x128xf32>
    %83 = arith.mulf %81, %82 : vector<8x128xf32>
    %84 = arith.addf %78, %83 : vector<8x128xf32>
    %85 = vector.extract_strided_slice %52 {offsets = [0, 5], sizes = [8, 1], strides = [1, 1]} : vector<8x128xf32> to vector<8x1xf32>
    %c14 = arith.constant 14 : index
    %c0_18 = arith.constant 0 : index
    %86 = vector.load %arg2[%c14, %c0_18] : memref<16x128xf32, #tpu.memory_space<vmem>>, vector<1x128xf32>
    %87 = vector.broadcast %85 : vector<8x1xf32> to vector<8x128xf32>
    %88 = vector.broadcast %86 : vector<1x128xf32> to vector<8x128xf32>
    %89 = arith.mulf %87, %88 : vector<8x128xf32>
    %90 = arith.addf %84, %89 : vector<8x128xf32>
    %91 = vector.extract_strided_slice %90 {offsets = [0, 0], sizes = [8, 13], strides = [1, 1]} : vector<8x128xf32> to vector<8x13xf32>
    %92 = math.tanh %91 : vector<8x13xf32>
    %c0_19 = arith.constant 0 : index
    %c0_20 = arith.constant 0 : index
    %93 = vector.load %arg3[%c0_19, %c0_20] : memref<8x13xf32, #tpu.memory_space<vmem>>, vector<8x13xf32>
    tpu.vector_store %arg3[%c0_19, %c0_20], %92 {strides = array<i32>} : memref<8x13xf32, #tpu.memory_space<vmem>>, vector<8x13xf32>,
    return
  }
  func.func @transform_0(%arg0: i32) -> (i32, i32) {
    %c0_i32 = arith.constant 0 : i32
    %c0_i32_0 = arith.constant 0 : i32
    return %arg0, %c0_i32 : i32, i32
  }
  func.func @transform_1(%arg0: i32) -> (i32, i32) {
    %c0_i32 = arith.constant 0 : i32
    %c0_i32_0 = arith.constant 0 : i32
    %c0_i32_1 = arith.constant 0 : i32
    return %c0_i32, %c0_i32_0 : i32, i32
  }
  func.func @transform_2(%arg0: i32) -> (i32, i32) {
    %c0_i32 = arith.constant 0 : i32
    %c0_i32_0 = arith.constant 0 : i32
    return %arg0, %c0_i32 : i32, i32
  }
}

</mosaic_0001>

<bundles_post_ra>
// kernel: tpu_custom_call.1
= control target key start
LH: loop header
LB: loop body
LE: loop exit
PB: predicated region body
PF: predicated region fallthrough
CT: control target
= control target key end

     0   :  { %7 = vsyncpa [#allocation3], 0  ;;  %s352_s0 = inlined_call_operand.vmem [shape: f32[8,3], index: 0, kind: input, shape index: {}]   ;;  %s353_s1 = inlined_call_operand.hbm [shape: f32[16,128], index: 1, kind: input, shape index: {}]   ;;  %s354_s2 = inlined_call_operand.hbm [shape: f32[8,13], index: 2, kind: output, shape index: {}]  }
   0x1   :  { %8 = vsyncpa [#allocation4], 0  ;;  %s300_s9 = smov [#allocation2]   ;;  %s252_s13 = scalar_lea.hbm %s353_s1, 256 }
   0x2   :  { %s16_s10 = sshll.u32 %s300_s9, 4  ;;  %p253_p0 = scmp.ne.s32.totalorder %s353_s1, %s252_s13  ;;  %s17_s10 = int_to_ptr.vmem [resolvable:$true] %s16_s10 }
   0x3   :  { %p256_p1 = scmp.lt.u32.totalorder %s252_s13, %s353_s1 }
   0x5   :  { %p258_p2 = pnand %p256_p1, %p253_p0 }
   0x7   :  { %261 = shalt.err (!%p258_p2)
}
   0x8   :  { %s262_s18 = scalar_lea.vmem %s17_s10, 256  ;;  %p267_p4 = scmp.lt.s32.totalorder %s17_s10, %s17_s10 }
   0x9   :  { %p263_p3 = scmp.ne.s32.totalorder %s17_s10, %s262_s18  ;;  %p268_p5 = scmp.lt.s32.totalorder %s262_s18, %s262_s18 }
   0xb   :  { %p269_p6 = por %p268_p5, %p267_p4 }
   0xd   :  { %p270_p7 = pnand %p269_p6, %p263_p3 }
   0xf   :  { %273 = shalt.err (!%p270_p7)
}
  0x10   :  { %s301_s19 = smov 128   ;;  %s302_s20 = smov 8  }
  0x11   :  { %22 = dma.hbm_to_vmem [thread:$0]  %s353_s1, 256, %s17_s10, [#allocation3], %s301_s19, %s301_s19, %s302_s20  }
  0x12   :  { %296 = dma.done.wait [#allocation3], 256  }
  0x13   :  { %297 = vsyncadd [#allocation3], 4294967040  ;;  %v303_v0 = vmov 0   ;;  %v304_v1 = vmov 2   ;;  %v26_v2 = vld [vmem:[%s352_s0] sm:$0xff]  ;;  %v305_v3 = vmov 1  }
  0x14   :  { %236 = vset.pattern.permute.xlu0 %v303_v0  ;;  %238 = vset.pattern.permute.xlu1 %v304_v1  ;;  %v210_v4 = vld [vmem:[#allocation2] ss:$0 sm:$0xff]  ;;  %v211_v7 = vld [vmem:[#allocation2 + $0x3] ss:$0 sm:$0xff]  ;;  %v212_v8 = vld [vmem:[#allocation2 + $0x1] ss:$0 sm:$0xff] }
  0x15   :  { %31 = vperm.xlu0 %236, %v26_v2   ;;  %57 = vperm.xlu1 %238, %v26_v2   ;;  %v213_v9 = vld [vmem:[#allocation2 + $0x2] ss:$0 sm:$0xff]  ;;  %v306_v19 = vmov 3   ;;  %v214_v20 = vld [vmem:[#allocation2 + $0x4] ss:$0 sm:$0xff]  ;;  %v307_v39 = vmov 4  }
  0x16   :  { %v215_v23 = vld [vmem:[#allocation2 + $0x8] ss:$0 sm:$0xff]  ;;  %v216_v24 = vld [vmem:[#allocation2 + $0x5] ss:$0 sm:$0xff]  ;;  %v217_v25 = vld [vmem:[#allocation2 + $0x6] ss:$0 sm:$0xff] }
  0x17   :  { %v218_v32 = vld [vmem:[#allocation2 + $0x7] ss:$0 sm:$0xff]  ;;  %v308_v40 = vmov 5   ;;  %v219_v41 = vld [vmem:[#allocation2 + $0x9] ss:$0 sm:$0xff]  ;;  %s309_s0 = smov [#allocation5]  }
  0x18   :  { %v220_v42 = vld [vmem:[#allocation2 + $0xf] ss:$0 sm:$0xff]  ;;  %v221_v45 = vld [vmem:[#allocation2 + $0xa] ss:$0 sm:$0xff]  ;;  %v222_v48 = vld [vmem:[#allocation2 + $0xb] ss:$0 sm:$0xff] }
  0x19   :  { %237 = vset.pattern.permute.xlu0 %v305_v3  ;;  %239 = vset.pattern.permute.xlu1 %v303_v0  ;;  %v223_v53 = vld [vmem:[#allocation2 + $0xc] ss:$0 sm:$0xff]  ;;  %v224_v54 = vld [vmem:[#allocation2 + $0xd] ss:$0 sm:$0xff]  ;;  %v225_v61 = vld [vmem:[#allocation2 + $0xe] ss:$0 sm:$0xff] }
  0x1a   :  { %46 = vperm.xlu0 %237, %v26_v2   ;;  %s201_s1 = sshll.u32 %s309_s0, 4  ;;  %vm193_vm0 = vcmask 105472   ;;  %s202_s1 = int_to_ptr.vmem [resolvable:$true] %s201_s1 }
  0x1b   :  { %s274_s25 = scalar_lea.vmem %s202_s1, 128  ;;  %p279_p9 = scmp.lt.s32.totalorder %s202_s1, %s202_s1 }
  0x1c   :  { %p275_p8 = scmp.ne.s32.totalorder %s202_s1, %s274_s25  ;;  %p280_p10 = scmp.lt.s32.totalorder %s274_s25, %s274_s25 }
  0x1e   :  { %241 = vset.pattern.permute.xlu0 %v304_v1  ;;  %p281_p11 = por %p280_p10, %p279_p9 }
  0x20   :  { %p282_p12 = pnand %p281_p11, %p275_p8 }
  0x94   :  { %v32_v5 = vpop.permute.xlu0 %31  ;;  %v58_v10 = vpop.permute.xlu1 %57 }
  0x95   :  { %v38_v6 = vmul.f32 %v210_v4, %v32_v5  ;;  %v64_v14 = vmul.f32 %v213_v9, %v58_v10 }
  0x97   :  { %v43_v12 = vadd.f32 %v211_v7, %v38_v6 }
  0x99   :  { %v47_v11 = vpop.permute.xlu0 %46 }
  0x9a   :  { %v53_v13 = vmul.f32 %v212_v8, %v47_v11 }
  0x9c   :  { %v54_v15 = vadd.f32 %v53_v13, %v43_v12 }
  0x9e   :  { %v65_v16 = vadd.f32 %v64_v14, %v54_v15 }
  0xa0   :  { %v66_v17 = vmul.f32 0.2, %v65_v16 }
  0xa2   :  { %v67_v18 = vmax.f32 %v65_v16, %v66_v17 }
  0xa4   :  { %98 = vperm.xlu0 %241, %v67_v18   ;;  %72 = vperm.xlu1 %239, %v67_v18  }
  0xa8   :  { %240 = vset.pattern.permute.xlu1 %v305_v3  ;;  %244 = vset.pattern.permute.xlu0 %v305_v3 }
  0xa9   :  { %87 = vperm.xlu1 %240, %v67_v18  }
  0xad   :  { %242 = vset.pattern.permute.xlu1 %v306_v19 }
  0xae   :  { %109 = vperm.xlu1 %242, %v67_v18  }
  0xb2   :  { %243 = vset.pattern.permute.xlu1 %v303_v0 }
 0x123   :  { %v73_v21 = vpop.permute.xlu1 %72  ;;  %v99_v26 = vpop.permute.xlu0 %98 }
 0x124   :  { %v79_v22 = vmul.f32 %v214_v20, %v73_v21  ;;  %v105_v30 = vmul.f32 %v217_v25, %v99_v26 }
 0x126   :  { %v84_v28 = vadd.f32 %v215_v23, %v79_v22 }
 0x128   :  { %v88_v27 = vpop.permute.xlu1 %87 }
 0x129   :  { %v94_v29 = vmul.f32 %v216_v24, %v88_v27 }
 0x12b   :  { %v95_v31 = vadd.f32 %v94_v29, %v84_v28 }
 0x12d   :  { %v106_v33 = vadd.f32 %v105_v30, %v95_v31  ;;  %v110_v34 = vpop.permute.xlu1 %109 }
 0x12e   :  { %v116_v35 = vmul.f32 %v218_v32, %v110_v34 }
 0x130   :  { %v117_v36 = vadd.f32 %v116_v35, %v106_v33 }
 0x132   :  { %v118_v37 = vmul.f32 0.2, %v117_v36 }
 0x134   :  { %v119_v38 = vmax.f32 %v117_v36, %v118_v37 }
 0x136   :  { %139 = vperm.xlu0 %244, %v119_v38   ;;  %124 = vperm.xlu1 %243, %v119_v38  }
 0x13a   :  { %247 = vset.pattern.permute.xlu0 %v307_v39  ;;  %245 = vset.pattern.permute.xlu1 %v304_v1 }
 0x13b   :  { %172 = vperm.xlu0 %247, %v119_v38   ;;  %150 = vperm.xlu1 %245, %v119_v38  }
 0x13f   :  { %246 = vset.pattern.permute.xlu1 %v306_v19  ;;  %249 = vset.pattern.permute.xlu0 %v308_v40 }
 0x140   :  { %161 = vperm.xlu1 %246, %v119_v38  }
 0x144   :  { %248 = vset.pattern.permute.xlu1 %v308_v40 }
 0x145   :  { %183 = vperm.xlu1 %248, %v119_v38  }
 0x1b5   :  { %v125_v43 = vpop.permute.xlu1 %124  ;;  %v140_v46 = vpop.permute.xlu0 %139 }
 0x1b6   :  { %v131_v44 = vmul.f32 %v219_v41, %v125_v43  ;;  %v146_v49 = vmul.f32 %v221_v45, %v140_v46 }
 0x1b8   :  { %v136_v47 = vadd.f32 %v220_v42, %v131_v44 }
 0x1ba   :  { %v151_v50 = vpop.permute.xlu1 %150  ;;  %v147_v51 = vadd.f32 %v146_v49, %v136_v47  ;;  %v173_v55 = vpop.permute.xlu0 %172 }
 0x1bb   :  { %v157_v52 = vmul.f32 %v222_v48, %v151_v50  ;;  %v179_v59 = vmul.f32 %v224_v54, %v173_v55 }
 0x1bd   :  { %v158_v57 = vadd.f32 %v157_v52, %v147_v51 }
 0x1bf   :  { %v162_v56 = vpop.permute.xlu1 %161 }
 0x1c0   :  { %v168_v58 = vmul.f32 %v223_v53, %v162_v56 }
 0x1c2   :  { %v169_v60 = vadd.f32 %v168_v58, %v158_v57 }
 0x1c4   :  { %v180_v62 = vadd.f32 %v179_v59, %v169_v60  ;;  %v184_v63 = vpop.permute.xlu1 %183 }
 0x1c5   :  { %v190_v0 = vmul.f32 %v225_v61, %v184_v63 }
 0x1c7   :  { %v191_v1 = vadd.f32 %v190_v0, %v180_v62 }
 0x1c9   :  { %250 = vtanh.f32 %v191_v1 }
 0x1d3   :  { %v251_v2 = vpop.eup %250 }
 0x1d4   :  { %194 = vst.msk [vmem:[#allocation5] sm:$0xff] %vm193_vm0, %v251_v2 }
 0x1d5   :  { %285 = shalt.err (!%p282_p12)
}
 0x1d6   :  { %s286_s28 = scalar_lea.hbm %s354_s2, 128 }
 0x1d7   :  { %p287_p13 = scmp.ne.s32.totalorder %s354_s2, %s286_s28  ;;  %p290_p0 = scmp.lt.u32.totalorder %s286_s28, %s354_s2 }
 0x1d9   :  { %p292_p1 = pnand %p290_p0, %p287_p13 }
 0x1db   :  { %295 = shalt.err (!%p292_p1)
}
 0x1dc   :  { %204 = dma.vmem_to_hbm [thread:$0]  %s202_s1, 128, %s354_s2, [#allocation4]  }
 0x1dd   :  { %298 = dma.done.wait [#allocation4], 128  }
 0x1de   :  { %299 = vsyncadd [#allocation4], 4294967168 }
 0x1df   :  { %208 = vsyncpa [#allocation3], 1 }
 0x1e0   :  { %209 = vsyncpa [#allocation4], 1 }

</bundles_post_ra>
